<compile_context>
chip_gen: v7x
topology: tpu7x:2x2x1
jax: 0.10.0
libtpu: 0.0.40
codegen_flags: <defaults>
</compile_context>

<pallas_src>
import functools

import jax
import jax.numpy as jnp
from jax.experimental import pallas as pl
from jax.experimental.pallas import tpu as pltpu

_LANE = 128
_DEFAULT_TARGET_BLOCK_BYTES = 4 * 1024 * 1024  # ~4 MiB per block


def _droppath_kernel(scale_ref, x_ref, o_ref):
    # scale_ref: VMEM f32[bb, 1]   (0.0 if dropped, 1/(1-p) if kept)
    # x_ref/o_ref: VMEM x.dtype[bb, tf]
    # Multiply in f32 (matches the reference "divide then mask" numerics) and
    # cast only the product back to the native dtype.
    o_ref[...] = (x_ref[...].astype(jnp.float32) * scale_ref[...]).astype(o_ref.dtype)


def _choose_block(B, F, itemsize, target_bytes):
    """Pick (bb, tf) for a (B, F) array.

    Legality: bb is a multiple of the sublane tile or equals B; tf is a
    multiple of 128 or equals F.  Ragged last blocks are fine (Pallas masks).
    """
    sublane = {4: 8, 2: 16, 1: 32}.get(itemsize, 8)
    total_bytes = B * F * itemsize
    row_bytes = max(F * itemsize, 1)

    if total_bytes <= target_bytes:
        bb, tf = B, F
    else:
        max_rows = target_bytes // row_bytes
        if max_rows >= sublane:
            # Several full rows fit the target: tile the batch axis only.
            bb = min(B, (max_rows // sublane) * sublane)
            tf = F
        else:
            # Even `sublane` rows overflow the target: tile the feature axis.
            bb = B if B < sublane else sublane
            tf = max(_LANE, (target_bytes // (bb * itemsize)) // _LANE * _LANE)
            if tf >= F:
                tf = F

    # v7x megacore: if everything collapsed into a single block but the
    # activation is non-trivial, split the feature axis so both cores work.
    if (pl.cdiv(B, bb) * pl.cdiv(F, tf) == 1
            and total_bytes >= (2 << 20) and F >= 2 * _LANE):
        half = ((pl.cdiv(F, 2) + _LANE - 1) // _LANE) * _LANE
        if half < F:
            tf = half
    return int(bb), int(tf)


@functools.partial(
    jax.jit,
    static_argnames=("p", "training", "donate_x", "target_block_bytes"))
def drop_path(x, key, *, p: float = 0.0, training: bool = True,
              donate_x: bool = False,
              target_block_bytes: int = _DEFAULT_TARGET_BLOCK_BYTES):
    """JAX/Pallas equivalent of DropPath.forward for NCDHW inputs.

    Keep decision matches the PyTorch module: keep iff p < U[0,1).
    Set donate_x=True only if the caller actually donates x's buffer.
    """
    if (not p) or (not training):
        return x

    B = x.shape[0]
    flat = x.reshape(B, -1)           # free bitcast view of contiguous NCDHW
    F = flat.shape[1]
    itemsize = x.dtype.itemsize

    bb, tf = _choose_block(B, F, itemsize, int(target_block_bytes))
    num_b = pl.cdiv(B, bb)
    num_f = pl.cdiv(F, tf)

    # Per-batch scale: 0.0 if dropped, 1/(1-p) if kept.  Guard p >= 1.0 so the
    # Python-level reciprocal never divides by zero (everything drops anyway).
    inv_keep = 0.0 if p >= 1.0 else 1.0 / (1.0 - float(p))
    u = jax.random.uniform(key, (B,), dtype=jnp.float32)
    scale = jnp.where(p < u, jnp.float32(inv_keep), jnp.float32(0.0)).reshape(B, 1)

    block_bytes = bb * tf * itemsize
    # 2 in + 2 out pipelined buffers + scale + internal scratch, with headroom;
    # explicit so v5e's 16 MiB default scoped VMEM doesn't force smaller tiles,
    # and well under v7x's 64 MiB physical VMEM.
    vmem_limit = int(min(48 * 1024 * 1024, max(32 * 1024 * 1024, 5 * block_bytes)))

    out_flat = pl.pallas_call(
        _droppath_kernel,
        out_shape=jax.ShapeDtypeStruct((B, F), x.dtype),
        grid=(num_b, num_f),
        in_specs=[
            pl.BlockSpec((bb, 1), lambda b, f: (b, 0)),    # per-batch scale
            pl.BlockSpec((bb, tf), lambda b, f: (b, f)),   # activation tile
        ],
        out_specs=pl.BlockSpec((bb, tf), lambda b, f: (b, f)),
        compiler_params=pltpu.CompilerParams(
            dimension_semantics=("parallel", "parallel"),
            vmem_limit_bytes=vmem_limit,
        ),
        cost_estimate=pl.CostEstimate(
            flops=B * F,
            transcendentals=0,
            bytes_accessed=2 * B * F * itemsize + B * 4,
        ),
        input_output_aliases=({1: 0} if donate_x else {}),
    )(scale, flat)

    return out_flat.reshape(x.shape)


if __name__ == "__main__":
    root = jax.random.PRNGKey(0)
    k_x, k_mask, k_x2, k_x3 = jax.random.split(root, 4)
    p = 0.3

    def reference(x, key, p):
        # pure JAX, same semantics as the PyTorch module
        B = x.shape[0]
        u = jax.random.uniform(key, (B,), dtype=jnp.float32)
        keep = (p < u).astype(jnp.float32).reshape((B,) + (1,) * (x.ndim - 1))
        return ((x.astype(jnp.float32) / (1.0 - p)) * keep).astype(x.dtype)

    # Test 1: lane-aligned feature count (F = 8192), f32, single block.
    x = jax.random.normal(k_x, (2, 4, 8, 16, 16), dtype=jnp.float32)
    out = jax.block_until_ready(drop_path(x, k_mask, p=p, training=True))
    ref = reference(x, k_mask, p)
    assert out.shape == x.shape and out.dtype == x.dtype
    assert jnp.allclose(out, ref, atol=1e-6, rtol=1e-5)

    # Test 2: eval mode / p=0 is identity.
    assert jnp.array_equal(
        jax.block_until_ready(drop_path(x, k_mask, p=p, training=False)), x)
    assert jnp.array_equal(
        jax.block_until_ready(drop_path(x, k_mask, p=0.0, training=True)), x)

    # Test 3: non-128-aligned F (F = 2400) -> ragged feature handling, no
    # pad/slice HBM passes.
    x2 = jax.random.normal(k_x2, (2, 5, 4, 8, 15), dtype=jnp.float32)
    out2 = jax.block_until_ready(drop_path(x2, k_mask, p=p, training=True))
    ref2 = reference(x2, k_mask, p)
    assert out2.shape == x2.shape
    assert jnp.allclose(out2, ref2, atol=1e-6, rtol=1e-5)

    # Test 4: small per-batch features + larger B with a tiny block target ->
    # exercises batch-axis tiling (bb < B), feature-axis tiling, and ragged
    # last blocks on BOTH grid axes (B=10 -> 8+2, F=1512 -> 512+512+488).
    x3 = jax.random.normal(k_x3, (10, 3, 7, 8, 9), dtype=jnp.float32)
    out3 = jax.block_until_ready(
        drop_path(x3, k_mask, p=p, training=True, target_block_bytes=16 * 1024))
    ref3 = reference(x3, k_mask, p)
    assert out3.shape == x3.shape
    assert jnp.allclose(out3, ref3, atol=1e-6, rtol=1e-5)

    # Test 5: bf16 path — f32 multiply inside the kernel, product cast to bf16.
    x_bf16 = x.astype(jnp.bfloat16)
    out_bf16 = jax.block_until_ready(drop_path(x_bf16, k_mask, p=p, training=True))
    ref_bf16 = reference(x_bf16, k_mask, p)
    assert out_bf16.dtype == jnp.bfloat16
    assert jnp.allclose(out_bf16.astype(jnp.float32),
                        ref_bf16.astype(jnp.float32), atol=1e-2, rtol=2e-2)

    # Test 6: in-place aliasing path (operand 1 -> output 0).
    out_d = jax.block_until_ready(
        drop_path(x, k_mask, p=p, training=True, donate_x=True))
    assert jnp.allclose(out_d, ref, atol=1e-6, rtol=1e-5)

    print("KERNEL_OK")
</pallas_src>

<mosaic_0001>
module attributes {stable_mosaic.version = 11 : i64} {
  func.func @_droppath_kernel(%arg0: i32, %arg1: i32, %arg2: memref<2x1xf32, #tpu.memory_space<vmem>>, %arg3: memref<2x8192xf32, #tpu.memory_space<vmem>>, %arg4: memref<2x8192xf32, #tpu.memory_space<vmem>>) attributes {dimension_semantics = [#tpu.dimension_semantics<parallel>, #tpu.dimension_semantics<parallel>], iteration_bounds = array<i64: 1, 1>, scalar_prefetch = 0 : i64, scratch_operands = 0 : i64, tpu.core_type = #tpu.core_type<tc>, window_params = [{transform_indices = @transform_0, window_bounds = array<i64: 2, 1>}, {transform_indices = @transform_1, window_bounds = array<i64: 2, 8192>}, {transform_indices = @transform_2, window_bounds = array<i64: 2, 8192>}]} {
    %c0 = arith.constant 0 : index
    %c0_0 = arith.constant 0 : index
    %0 = vector.load %arg3[%c0, %c0_0] : memref<2x8192xf32, #tpu.memory_space<vmem>>, vector<2x8192xf32>
    %c0_1 = arith.constant 0 : index
    %c0_2 = arith.constant 0 : index
    %1 = vector.load %arg2[%c0_1, %c0_2] : memref<2x1xf32, #tpu.memory_space<vmem>>, vector<2x1xf32>
    %2 = vector.broadcast %1 : vector<2x1xf32> to vector<2x8192xf32>
    %3 = arith.mulf %0, %2 : vector<2x8192xf32>
    %c0_3 = arith.constant 0 : index
    %c0_4 = arith.constant 0 : index
    %4 = vector.load %arg4[%c0_3, %c0_4] : memref<2x8192xf32, #tpu.memory_space<vmem>>, vector<2x8192xf32>
    tpu.vector_store %arg4[%c0_3, %c0_4], %3 {strides = array<i32>} : memref<2x8192xf32, #tpu.memory_space<vmem>>, vector<2x8192xf32>,
    return
  }
  func.func @transform_0(%arg0: i32, %arg1: i32) -> (i32, i32) {
    %c0_i32 = arith.constant 0 : i32
    %c0_i32_0 = arith.constant 0 : i32
    return %arg0, %c0_i32 : i32, i32
  }
  func.func @transform_1(%arg0: i32, %arg1: i32) -> (i32, i32) {
    %c0_i32 = arith.constant 0 : i32
    return %arg0, %arg1 : i32, i32
  }
  func.func @transform_2(%arg0: i32, %arg1: i32) -> (i32, i32) {
    %c0_i32 = arith.constant 0 : i32
    return %arg0, %arg1 : i32, i32
  }
}

</mosaic_0001>

<bundles_post_ra>
// kernel: drop_path.1
= control target key start
LH: loop header
LB: loop body
LE: loop exit
PB: predicated region body
PF: predicated region fallthrough
CT: control target
= control target key end

     0   :  { %v79_v0 = vmov 0   ;;  %v80_v2 = vmov 269488144   ;;  %v35_v4 = vlaneseq  ;;  %s195_s0 = inlined_call_operand.vmem [shape: f32[2,1], index: 0, kind: input, shape index: {}]   ;;  %s196_s1 = inlined_call_operand.vmem [shape: f32[2,8192], index: 1, kind: input, shape index: {}]   ;;  %s197_s2 = inlined_call_operand.vmem [shape: f32[2,8192], index: 2, kind: output, shape index: {}]  }
   0x1   :  { %78 = vset.pattern.permute.xlu0 %v79_v0  ;;  %v27_v1 = vld [vmem:[%s195_s0] sm:$0x3]  ;;  %v33_v3 = vunpack.c.l.s4 %v80_v2  ;;  %v12_v9 = vld [vmem:[%s196_s1 + $0x8] sm:$0xff]  ;;  %v13_v10 = vld [vmem:[%s196_s1 + $0x10] sm:$0xff] }
   0x2   :  { %30 = vperm.xlu0 %78, %v27_v1   ;;  %v36_v6 = vshrl.u32 %v35_v4, 7  ;;  %v11_v8 = vld [vmem:[%s196_s1] sm:$0xff]  ;;  %v14_v11 = vld [vmem:[%s196_s1 + $0x18] sm:$0xff]  ;;  %v16_v13 = vld [vmem:[%s196_s1 + $0x28] sm:$0xff] }
   0x3   :  { %v34_v5 = vunpack.c.0.s8 %v33_v3  ;;  %v15_v12 = vld [vmem:[%s196_s1 + $0x20] sm:$0xff]  ;;  %v17_v14 = vld [vmem:[%s196_s1 + $0x30] sm:$0xff]  ;;  %v18_v16 = vld [vmem:[%s196_s1 + $0x38] sm:$0xff] }
   0x4   :  { %v19_v17 = vld [vmem:[%s196_s1 + $0x40] sm:$0xff]  ;;  %v20_v18 = vld [vmem:[%s196_s1 + $0x48] sm:$0xff]  ;;  %v21_v20 = vld [vmem:[%s196_s1 + $0x50] sm:$0xff] }
   0x5   :  { %v37_v7 = vsub.s32 %v34_v5, %v36_v6  ;;  %v22_v21 = vld [vmem:[%s196_s1 + $0x58] sm:$0xff]  ;;  %v23_v22 = vld [vmem:[%s196_s1 + $0x60] sm:$0xff]  ;;  %v24_v23 = vld [vmem:[%s196_s1 + $0x68] sm:$0xff] }
   0x6   :  { %v25_v24 = vld [vmem:[%s196_s1 + $0x70] sm:$0xff]  ;;  %v26_v25 = vld [vmem:[%s196_s1 + $0x78] sm:$0xff] }
  0x81   :  { %v31_v15 = vpop.permute.xlu0 %30 }
  0x82   :  { %v38_v19 = vrot.slane %v31_v15, %v37_v7 }
  0x84   :  { %v40_v26 = vmul.f32 %v38_v19, %v11_v8  ;;  %v41_v27 = vmul.f32 %v38_v19, %v12_v9  ;;  %v42_v28 = vmul.f32 %v38_v19, %v13_v10  ;;  %v43_v29 = vmul.f32 %v38_v19, %v14_v11 }
  0x85   :  { %v44_v30 = vmul.f32 %v38_v19, %v15_v12  ;;  %v45_v31 = vmul.f32 %v38_v19, %v16_v13  ;;  %v46_v32 = vmul.f32 %v38_v19, %v17_v14  ;;  %v47_v33 = vmul.f32 %v38_v19, %v18_v16 }
  0x86   :  { %v48_v34 = vmul.f32 %v38_v19, %v19_v17  ;;  %v49_v35 = vmul.f32 %v38_v19, %v20_v18  ;;  %v50_v36 = vmul.f32 %v38_v19, %v21_v20  ;;  %v51_v37 = vmul.f32 %v38_v19, %v22_v21  ;;  %56 = vst [vmem:[%s197_s2] sm:$0xff] %v40_v26 }
  0x87   :  { %57 = vst [vmem:[%s197_s2 + $0x8] sm:$0xff] %v41_v27  ;;  %58 = vst [vmem:[%s197_s2 + $0x10] sm:$0xff] %v42_v28  ;;  %v52_v38 = vmul.f32 %v38_v19, %v23_v22  ;;  %v53_v39 = vmul.f32 %v38_v19, %v24_v23  ;;  %v54_v40 = vmul.f32 %v38_v19, %v25_v24 }
  0x88   :  { %59 = vst [vmem:[%s197_s2 + $0x18] sm:$0xff] %v43_v29  ;;  %v55_v41 = vmul.f32 %v38_v19, %v26_v25  ;;  %60 = vst [vmem:[%s197_s2 + $0x20] sm:$0xff] %v44_v30 }
  0x89   :  { %61 = vst [vmem:[%s197_s2 + $0x28] sm:$0xff] %v45_v31  ;;  %62 = vst [vmem:[%s197_s2 + $0x30] sm:$0xff] %v46_v32 }
  0x8a   :  { %63 = vst [vmem:[%s197_s2 + $0x38] sm:$0xff] %v47_v33  ;;  %64 = vst [vmem:[%s197_s2 + $0x40] sm:$0xff] %v48_v34 }
  0x8b   :  { %65 = vst [vmem:[%s197_s2 + $0x48] sm:$0xff] %v49_v35  ;;  %66 = vst [vmem:[%s197_s2 + $0x50] sm:$0xff] %v50_v36 }
  0x8c   :  { %67 = vst [vmem:[%s197_s2 + $0x58] sm:$0xff] %v51_v37  ;;  %68 = vst [vmem:[%s197_s2 + $0x60] sm:$0xff] %v52_v38 }
  0x8d   :  { %69 = vst [vmem:[%s197_s2 + $0x68] sm:$0xff] %v53_v39  ;;  %70 = vst [vmem:[%s197_s2 + $0x70] sm:$0xff] %v54_v40 }
  0x8e   :  { %71 = vst [vmem:[%s197_s2 + $0x78] sm:$0xff] %v55_v41 }

</bundles_post_ra>
